<compile_context>
chip_gen: v7x
topology: tpu7x:2x2x1
jax: 0.10.0
libtpu: 0.0.40
codegen_flags: <defaults>
</compile_context>

<pallas_src>
import functools

import jax
import jax.numpy as jnp
from jax.experimental import pallas as pl
from jax.experimental.pallas import tpu as pltpu


def _activation(name, x, channel_axis=0):
    """Static dispatch matching get_activation (only the chosen branch is traced)."""
    if name == "relu":
        return jnp.maximum(x, 0.0)
    if name == "leaky_relu":
        return jnp.where(x >= 0, x, 0.01 * x)
    if name == "gelu":
        return jax.nn.gelu(x, approximate=False)
    if name == "sigmoid":
        return jax.nn.sigmoid(x)
    if name == "mish":
        return x * jnp.tanh(jax.nn.softplus(x))
    if name == "softmax":
        return jax.nn.softmax(x, axis=channel_axis)  # nn.Softmax(dim=1) == channel dim
    raise ValueError(f"Unsupported activation function: {name}")


def _fused_conv_block_kernel(x_ref, w1_ref, b1_ref, w2_ref, b2_ref, o_ref, *,
                             H, W, kh, kw, batch_normalization, activation,
                             use_bf16_mxu):
    """One batch element per grid step.

    x_ref : (1, Cin, L)       unpadded input, flat row-major at width W (L = H*W)
    w1_ref: (Cout, kh*kw*Cin) conv1 weights, K ordered (kh, kw, cin)
    b1_ref: (Cout, 1)
    w2_ref: (Cout, kh*kw*Cout)
    b2_ref: (Cout, 1)
    o_ref : (1, Cout, L)      output, flat row-major at width W (already NCHW order)
    """
    L = H * W
    ph, pw = kh // 2, kw // 2
    P = ph * W + pw  # head/tail zero pad length of the flat layout
    col = jax.lax.broadcasted_iota(jnp.int32, (1, L), 1) % W  # output column index

    def conv_same(src, w_ref, b_ref):
        # src: (Cs, L) flat unpadded source living in VMEM/vregs.
        Cs = src.shape[0]
        zpad = jnp.zeros((Cs, P), src.dtype)
        xp = jnp.concatenate([zpad, src, zpad], axis=1)          # (Cs, L + 2P)

        # im2col: each tap is a shifted slice of the padded flat buffer; the
        # top/bottom halo is covered by the zero head/tail, the left/right
        # row-wrap of the off-center columns is masked out (VPU select).
        taps = []
        for dh in range(-ph, ph + 1):
            for dw in range(-pw, pw + 1):
                off = P + dh * W + dw
                t = xp[:, off:off + L]
                if dw < 0:
                    t = jnp.where(col >= -dw, t, 0.0)
                elif dw > 0:
                    t = jnp.where(col < W - dw, t, 0.0)
                taps.append(t)
        patches = jnp.concatenate(taps, axis=0)                  # (kh*kw*Cs, L)

        w = w_ref[...]
        if use_bf16_mxu:
            patches = patches.astype(jnp.bfloat16)
            w = w.astype(jnp.bfloat16)
        acc = jnp.dot(w, patches, preferred_element_type=jnp.float32)  # (Cout, L)
        acc = acc + b_ref[...]                                   # (Cout, 1) broadcast

        if batch_normalization:
            # nn.InstanceNorm2d(affine=False, eps=1e-5): per-(sample, channel)
            # statistics over all H*W positions (all columns are valid here).
            mean = jnp.mean(acc, axis=1, keepdims=True)
            var = jnp.mean((acc - mean) ** 2, axis=1, keepdims=True)
            acc = (acc - mean) * jax.lax.rsqrt(var + 1e-5)
        return _activation(activation, acc, channel_axis=0)

    y1 = conv_same(x_ref[0].astype(jnp.float32), w1_ref, b1_ref)  # (Cout, L)
    y2 = conv_same(y1, w2_ref, b2_ref)                            # (Cout, L)
    o_ref[0] = y2.astype(o_ref.dtype)


def convolution_block_forward(params, x_nchw, *, kernel_size=(3, 3),
                              batch_normalization=False, activation="relu",
                              use_bf16_mxu=False):
    """Equivalent of ConvolutionBlock.forward on an NCHW input (odd kernel sizes)."""
    N, Cin, H, W = x_nchw.shape
    kh, kw = kernel_size
    assert kh % 2 == 1 and kw % 2 == 1, "only odd kernel sizes keep 'same' spatial size"
    Cout = params["w1"].shape[0]
    KK = kh * kw
    L = H * W

    # Free layout changes (no data movement): flatten spatial, reshape weights to
    # (O, kh*kw*I) with K ordered (kh, kw, cin) to match the kernel's im2col rows.
    x_flat = x_nchw.reshape(N, Cin, L)
    w1 = jnp.transpose(params["w1"], (0, 2, 3, 1)).reshape(Cout, KK * Cin)
    w2 = jnp.transpose(params["w2"], (0, 2, 3, 1)).reshape(Cout, KK * Cout)
    b1 = params["b1"].reshape(Cout, 1)
    b2 = params["b2"].reshape(Cout, 1)

    kernel = functools.partial(
        _fused_conv_block_kernel, H=H, W=W, kh=kh, kw=kw,
        batch_normalization=batch_normalization,
        activation=activation, use_bf16_mxu=use_bf16_mxu)

    # Rough per-step VMEM estimate: double-buffered I/O blocks + im2col patch
    # buffers + intermediates + weights.  Only raise the scoped limit if needed.
    est_bytes = 4 * (L * (2 * (Cin + Cout) + KK * (Cin + Cout) + 4 * Cout)
                     + KK * Cout * (Cin + Cout))
    compiler_kwargs = {}
    if est_bytes > (32 << 20):
        compiler_kwargs["vmem_limit_bytes"] = min(2 * est_bytes, 64 << 20)
        # TODO(synk): switch to row-strip spatial tiling instead once even the
        #             raised limit is insufficient.

    out_flat = pl.pallas_call(
        kernel,
        out_shape=jax.ShapeDtypeStruct((N, Cout, L), x_nchw.dtype),
        grid_spec=pltpu.PrefetchScalarGridSpec(
            num_scalar_prefetch=0,
            grid=(N,),
            in_specs=[
                pl.BlockSpec((1, Cin, L), lambda n: (n, 0, 0)),
                pl.BlockSpec((Cout, KK * Cin), lambda n: (0, 0)),
                pl.BlockSpec((Cout, 1), lambda n: (0, 0)),
                pl.BlockSpec((Cout, KK * Cout), lambda n: (0, 0)),
                pl.BlockSpec((Cout, 1), lambda n: (0, 0)),
            ],
            out_specs=pl.BlockSpec((1, Cout, L), lambda n: (n, 0, 0)),
        ),
        compiler_params=pltpu.CompilerParams(
            dimension_semantics=("parallel",), **compiler_kwargs),
    )(x_flat, w1, b1, w2, b2)

    # Already NCHW-ordered; reshape is free.
    return out_flat.reshape(N, Cout, H, W)


def init_convolution_block_params(key, in_channels, out_channels, kernel_size=(3, 3)):
    """Deterministic synthetic params, shapes matching nn.Conv2d (OIHW + bias)."""
    kh, kw = kernel_size
    k1, k2, k3, k4 = jax.random.split(key, 4)

    def conv_init(kw_, kb_, cin, cout):
        fan_in = cin * kh * kw
        bound = 1.0 / jnp.sqrt(fan_in)
        w = jax.random.uniform(kw_, (cout, cin, kh, kw), jnp.float32, -bound, bound)
        b = jax.random.uniform(kb_, (cout,), jnp.float32, -bound, bound)
        return w, b

    w1, b1 = conv_init(k1, k2, in_channels, out_channels)
    w2, b2 = conv_init(k3, k4, out_channels, out_channels)
    return {"w1": w1, "b1": b1, "w2": w2, "b2": b2}


def _reference_forward(params, x, *, batch_normalization=False, activation="relu"):
    """Pure-JAX reference of ConvolutionBlock.forward (NCHW)."""
    def conv(h, w, b):
        y = jax.lax.conv_general_dilated(
            h, w, window_strides=(1, 1), padding="SAME",
            dimension_numbers=("NCHW", "OIHW", "NCHW"),
            precision=jax.lax.Precision.HIGHEST)
        return y + b.reshape(1, -1, 1, 1)

    def norm(y):
        if not batch_normalization:
            return y
        mean = jnp.mean(y, axis=(2, 3), keepdims=True)
        var = jnp.mean((y - mean) ** 2, axis=(2, 3), keepdims=True)
        return (y - mean) * jax.lax.rsqrt(var + 1e-5)

    act = lambda y: _activation(activation, y, channel_axis=1)
    y = act(norm(conv(x, params["w1"], params["b1"])))
    return act(norm(conv(y, params["w2"], params["b2"])))


if __name__ == "__main__":
    key = jax.random.PRNGKey(0)
    k_x, k_p = jax.random.split(key)

    N, C_in, C_out, H, W = 2, 4, 8, 16, 16
    x = jax.random.normal(k_x, (N, C_in, H, W), jnp.float32)  # NCHW, PyTorch layout
    params = init_convolution_block_params(k_p, C_in, C_out, (3, 3))

    # Default config: no norm, ReLU (module defaults).
    fwd = jax.jit(lambda p, xx: convolution_block_forward(
        p, xx, batch_normalization=False, activation="relu"))
    out = jax.block_until_ready(fwd(params, x))
    assert out.shape == (N, C_out, H, W), out.shape
    assert out.dtype == jnp.float32
    ref = _reference_forward(params, x, batch_normalization=False, activation="relu")
    err = float(jnp.max(jnp.abs(out - ref)))
    assert err < 1e-3, f"max abs error vs reference (relu): {err}"

    # InstanceNorm + leaky_relu config.
    fwd_bn = jax.jit(lambda p, xx: convolution_block_forward(
        p, xx, batch_normalization=True, activation="leaky_relu"))
    out_bn = jax.block_until_ready(fwd_bn(params, x))
    ref_bn = _reference_forward(params, x, batch_normalization=True,
                                activation="leaky_relu")
    err_bn = float(jnp.max(jnp.abs(out_bn - ref_bn)))
    assert err_bn < 2e-3, f"max abs error vs reference (instnorm+leaky_relu): {err_bn}"

    print("KERNEL_OK")
</pallas_src>

<mosaic_0001>
module attributes {stable_mosaic.version = 11 : i64} {
  func.func @_fused_conv_block_kernel(%arg0: i32, %arg1: memref<1x4x256xf32, #tpu.memory_space<vmem>>, %arg2: memref<8x36xf32, #tpu.memory_space<vmem>>, %arg3: memref<8x1xf32, #tpu.memory_space<vmem>>, %arg4: memref<8x72xf32, #tpu.memory_space<vmem>>, %arg5: memref<8x1xf32, #tpu.memory_space<vmem>>, %arg6: memref<1x8x256xf32, #tpu.memory_space<vmem>>) attributes {dimension_semantics = [#tpu.dimension_semantics<parallel>], iteration_bounds = array<i64: 2>, scalar_prefetch = 0 : i64, scratch_operands = 0 : i64, tpu.core_type = #tpu.core_type<tc>, window_params = [{transform_indices = @transform_0, window_bounds = array<i64: 1, 4, 256>}, {pipeline_mode = #tpu.pipeline_mode<synchronous>, transform_indices = @transform_1, window_bounds = array<i64: 8, 36>}, {pipeline_mode = #tpu.pipeline_mode<synchronous>, transform_indices = @transform_2, window_bounds = array<i64: 8, 1>}, {pipeline_mode = #tpu.pipeline_mode<synchronous>, transform_indices = @transform_3, window_bounds = array<i64: 8, 72>}, {pipeline_mode = #tpu.pipeline_mode<synchronous>, transform_indices = @transform_4, window_bounds = array<i64: 8, 1>}, {transform_indices = @transform_5, window_bounds = array<i64: 1, 8, 256>}]} {
    %0 = tpu.iota {dimensions = array<i32: 1>} : vector<1x256xi32>
    %c16_i32 = arith.constant 16 : i32
    %c0_i32 = arith.constant 0 : i32
    %1 = arith.cmpi eq, %c16_i32, %c0_i32 : i32
    %c1_i32 = arith.constant 1 : i32
    %2 = arith.select %1, %c1_i32, %c16_i32 : i32
    %3 = vector.broadcast %2 : i32 to vector<1x256xi32>
    %4 = arith.remsi %0, %3 : vector<1x256xi32>
    %c0_i32_0 = arith.constant 0 : i32
    %5 = vector.broadcast %c0_i32_0 : i32 to vector<1x256xi32>
    %6 = arith.cmpi ne, %4, %5 : vector<1x256xi32>
    %c0_i32_1 = arith.constant 0 : i32
    %7 = vector.broadcast %c0_i32_1 : i32 to vector<1x256xi32>
    %8 = arith.cmpi slt, %4, %7 : vector<1x256xi32>
    %c0_i32_2 = arith.constant 0 : i32
    %9 = arith.cmpi slt, %2, %c0_i32_2 : i32
    %10 = vector.broadcast %9 : i1 to vector<1x256xi1>
    %11 = vector.broadcast %10 : vector<1x256xi1> to vector<1x256xi1>
    %12 = arith.xori %8, %11 : vector<1x256xi1>
    %13 = arith.andi %12, %6 : vector<1x256xi1>
    %14 = vector.broadcast %2 : i32 to vector<1x256xi32>
    %15 = arith.addi %4, %14 : vector<1x256xi32>
    %16 = arith.select %13, %15, %4 : vector<1x256xi1>, vector<1x256xi32>
    %c0 = arith.constant 0 : index
    %c0_3 = arith.constant 0 : index
    %c0_4 = arith.constant 0 : index
    %17 = vector.load %arg1[%c0, %c0_3, %c0_4] : memref<1x4x256xf32, #tpu.memory_space<vmem>>, vector<1x4x256xf32>
    %18 = vector.shape_cast %17 : vector<1x4x256xf32> to vector<4x256xf32>
    %cst = arith.constant 0.000000e+00 : f32
    %19 = vector.broadcast %cst : f32 to vector<4x17xf32>
    %20 = tpu.concatenate %19, %18, %19 in 1 : vector<4x17xf32>, vector<4x256xf32>, vector<4x17xf32> -> vector<4x290xf32>
    %21 = vector.extract_strided_slice %20 {offsets = [0, 0], sizes = [4, 256], strides = [1, 1]} : vector<4x290xf32> to vector<4x256xf32>
    %c1_i32_5 = arith.constant 1 : i32
    %22 = vector.broadcast %c1_i32_5 : i32 to vector<1x256xi32>
    %23 = arith.cmpi sge, %16, %22 : vector<1x256xi32>
    %cst_6 = arith.constant 0.000000e+00 : f32
    %24 = vector.shape_cast %23 : vector<1x256xi1> to vector<1x256xi1>
    %25 = vector.broadcast %24 : vector<1x256xi1> to vector<4x256xi1>
    %26 = vector.broadcast %cst_6 : f32 to vector<4x256xf32>
    %27 = arith.select %25, %21, %26 : vector<4x256xi1>, vector<4x256xf32>
    %28 = vector.extract_strided_slice %20 {offsets = [0, 1], sizes = [4, 256], strides = [1, 1]} : vector<4x290xf32> to vector<4x256xf32>
    %29 = vector.extract_strided_slice %20 {offsets = [0, 2], sizes = [4, 256], strides = [1, 1]} : vector<4x290xf32> to vector<4x256xf32>
    %c15_i32 = arith.constant 15 : i32
    %30 = vector.broadcast %c15_i32 : i32 to vector<1x256xi32>
    %31 = arith.cmpi slt, %16, %30 : vector<1x256xi32>
    %cst_7 = arith.constant 0.000000e+00 : f32
    %32 = vector.shape_cast %31 : vector<1x256xi1> to vector<1x256xi1>
    %33 = vector.broadcast %32 : vector<1x256xi1> to vector<4x256xi1>
    %34 = vector.broadcast %cst_7 : f32 to vector<4x256xf32>
    %35 = arith.select %33, %29, %34 : vector<4x256xi1>, vector<4x256xf32>
    %36 = vector.extract_strided_slice %20 {offsets = [0, 16], sizes = [4, 256], strides = [1, 1]} : vector<4x290xf32> to vector<4x256xf32>
    %c1_i32_8 = arith.constant 1 : i32
    %37 = vector.broadcast %c1_i32_8 : i32 to vector<1x256xi32>
    %38 = arith.cmpi sge, %16, %37 : vector<1x256xi32>
    %cst_9 = arith.constant 0.000000e+00 : f32
    %39 = vector.shape_cast %38 : vector<1x256xi1> to vector<1x256xi1>
    %40 = vector.broadcast %39 : vector<1x256xi1> to vector<4x256xi1>
    %41 = vector.broadcast %cst_9 : f32 to vector<4x256xf32>
    %42 = arith.select %40, %36, %41 : vector<4x256xi1>, vector<4x256xf32>
    %43 = vector.extract_strided_slice %20 {offsets = [0, 17], sizes = [4, 256], strides = [1, 1]} : vector<4x290xf32> to vector<4x256xf32>
    %44 = vector.extract_strided_slice %20 {offsets = [0, 18], sizes = [4, 256], strides = [1, 1]} : vector<4x290xf32> to vector<4x256xf32>
    %c15_i32_10 = arith.constant 15 : i32
    %45 = vector.broadcast %c15_i32_10 : i32 to vector<1x256xi32>
    %46 = arith.cmpi slt, %16, %45 : vector<1x256xi32>
    %cst_11 = arith.constant 0.000000e+00 : f32
    %47 = vector.shape_cast %46 : vector<1x256xi1> to vector<1x256xi1>
    %48 = vector.broadcast %47 : vector<1x256xi1> to vector<4x256xi1>
    %49 = vector.broadcast %cst_11 : f32 to vector<4x256xf32>
    %50 = arith.select %48, %44, %49 : vector<4x256xi1>, vector<4x256xf32>
    %51 = vector.extract_strided_slice %20 {offsets = [0, 32], sizes = [4, 256], strides = [1, 1]} : vector<4x290xf32> to vector<4x256xf32>
    %c1_i32_12 = arith.constant 1 : i32
    %52 = vector.broadcast %c1_i32_12 : i32 to vector<1x256xi32>
    %53 = arith.cmpi sge, %16, %52 : vector<1x256xi32>
    %cst_13 = arith.constant 0.000000e+00 : f32
    %54 = vector.shape_cast %53 : vector<1x256xi1> to vector<1x256xi1>
    %55 = vector.broadcast %54 : vector<1x256xi1> to vector<4x256xi1>
    %56 = vector.broadcast %cst_13 : f32 to vector<4x256xf32>
    %57 = arith.select %55, %51, %56 : vector<4x256xi1>, vector<4x256xf32>
    %58 = vector.extract_strided_slice %20 {offsets = [0, 33], sizes = [4, 256], strides = [1, 1]} : vector<4x290xf32> to vector<4x256xf32>
    %59 = vector.extract_strided_slice %20 {offsets = [0, 34], sizes = [4, 256], strides = [1, 1]} : vector<4x290xf32> to vector<4x256xf32>
    %c15_i32_14 = arith.constant 15 : i32
    %60 = vector.broadcast %c15_i32_14 : i32 to vector<1x256xi32>
    %61 = arith.cmpi slt, %16, %60 : vector<1x256xi32>
    %cst_15 = arith.constant 0.000000e+00 : f32
    %62 = vector.shape_cast %61 : vector<1x256xi1> to vector<1x256xi1>
    %63 = vector.broadcast %62 : vector<1x256xi1> to vector<4x256xi1>
    %64 = vector.broadcast %cst_15 : f32 to vector<4x256xf32>
    %65 = arith.select %63, %59, %64 : vector<4x256xi1>, vector<4x256xf32>
    %66 = tpu.concatenate %27, %28, %35, %42, %43, %50, %57, %58, %65 in 0 : vector<4x256xf32>, vector<4x256xf32>, vector<4x256xf32>, vector<4x256xf32>, vector<4x256xf32>, vector<4x256xf32>, vector<4x256xf32>, vector<4x256xf32>, vector<4x256xf32> -> vector<36x256xf32>
    %c0_16 = arith.constant 0 : index
    %c0_17 = arith.constant 0 : index
    %67 = vector.load %arg2[%c0_16, %c0_17] : memref<8x36xf32, #tpu.memory_space<vmem>>, vector<8x36xf32>
    %cst_18 = arith.constant dense<0.000000e+00> : vector<8x256xf32>
    %68 = tpu.matmul %67, %66, %cst_18 {dimension_numbers = #tpu.dot_dimension_numbers<[1], [0], [0], [1], [0, 0, 1, 1], [], []>} : vector<8x36xf32>, vector<36x256xf32>, vector<8x256xf32> -> vector<8x256xf32>
    %c0_19 = arith.constant 0 : index
    %c0_20 = arith.constant 0 : index
    %69 = vector.load %arg3[%c0_19, %c0_20] : memref<8x1xf32, #tpu.memory_space<vmem>>, vector<8x1xf32>
    %70 = vector.broadcast %69 : vector<8x1xf32> to vector<8x256xf32>
    %71 = arith.addf %68, %70 : vector<8x256xf32>
    %cst_21 = arith.constant 0.000000e+00 : f32
    %72 = vector.broadcast %cst_21 : f32 to vector<8x256xf32>
    %73 = arith.maximumf %71, %72 : vector<8x256xf32>
    %cst_22 = arith.constant 0.000000e+00 : f32
    %74 = vector.broadcast %cst_22 : f32 to vector<8x17xf32>
    %75 = tpu.concatenate %74, %73, %74 in 1 : vector<8x17xf32>, vector<8x256xf32>, vector<8x17xf32> -> vector<8x290xf32>
    %76 = vector.extract_strided_slice %75 {offsets = [0, 0], sizes = [8, 256], strides = [1, 1]} : vector<8x290xf32> to vector<8x256xf32>
    %c1_i32_23 = arith.constant 1 : i32
    %77 = vector.broadcast %c1_i32_23 : i32 to vector<1x256xi32>
    %78 = arith.cmpi sge, %16, %77 : vector<1x256xi32>
    %cst_24 = arith.constant 0.000000e+00 : f32
    %79 = vector.shape_cast %78 : vector<1x256xi1> to vector<1x256xi1>
    %80 = vector.broadcast %79 : vector<1x256xi1> to vector<8x256xi1>
    %81 = vector.broadcast %cst_24 : f32 to vector<8x256xf32>
    %82 = arith.select %80, %76, %81 : vector<8x256xi1>, vector<8x256xf32>
    %83 = vector.extract_strided_slice %75 {offsets = [0, 1], sizes = [8, 256], strides = [1, 1]} : vector<8x290xf32> to vector<8x256xf32>
    %84 = vector.extract_strided_slice %75 {offsets = [0, 2], sizes = [8, 256], strides = [1, 1]} : vector<8x290xf32> to vector<8x256xf32>
    %c15_i32_25 = arith.constant 15 : i32
    %85 = vector.broadcast %c15_i32_25 : i32 to vector<1x256xi32>
    %86 = arith.cmpi slt, %16, %85 : vector<1x256xi32>
    %cst_26 = arith.constant 0.000000e+00 : f32
    %87 = vector.shape_cast %86 : vector<1x256xi1> to vector<1x256xi1>
    %88 = vector.broadcast %87 : vector<1x256xi1> to vector<8x256xi1>
    %89 = vector.broadcast %cst_26 : f32 to vector<8x256xf32>
    %90 = arith.select %88, %84, %89 : vector<8x256xi1>, vector<8x256xf32>
    %91 = vector.extract_strided_slice %75 {offsets = [0, 16], sizes = [8, 256], strides = [1, 1]} : vector<8x290xf32> to vector<8x256xf32>
    %c1_i32_27 = arith.constant 1 : i32
    %92 = vector.broadcast %c1_i32_27 : i32 to vector<1x256xi32>
    %93 = arith.cmpi sge, %16, %92 : vector<1x256xi32>
    %cst_28 = arith.constant 0.000000e+00 : f32
    %94 = vector.shape_cast %93 : vector<1x256xi1> to vector<1x256xi1>
    %95 = vector.broadcast %94 : vector<1x256xi1> to vector<8x256xi1>
    %96 = vector.broadcast %cst_28 : f32 to vector<8x256xf32>
    %97 = arith.select %95, %91, %96 : vector<8x256xi1>, vector<8x256xf32>
    %98 = vector.extract_strided_slice %75 {offsets = [0, 17], sizes = [8, 256], strides = [1, 1]} : vector<8x290xf32> to vector<8x256xf32>
    %99 = vector.extract_strided_slice %75 {offsets = [0, 18], sizes = [8, 256], strides = [1, 1]} : vector<8x290xf32> to vector<8x256xf32>
    %c15_i32_29 = arith.constant 15 : i32
    %100 = vector.broadcast %c15_i32_29 : i32 to vector<1x256xi32>
    %101 = arith.cmpi slt, %16, %100 : vector<1x256xi32>
    %cst_30 = arith.constant 0.000000e+00 : f32
    %102 = vector.shape_cast %101 : vector<1x256xi1> to vector<1x256xi1>
    %103 = vector.broadcast %102 : vector<1x256xi1> to vector<8x256xi1>
    %104 = vector.broadcast %cst_30 : f32 to vector<8x256xf32>
    %105 = arith.select %103, %99, %104 : vector<8x256xi1>, vector<8x256xf32>
    %106 = vector.extract_strided_slice %75 {offsets = [0, 32], sizes = [8, 256], strides = [1, 1]} : vector<8x290xf32> to vector<8x256xf32>
    %c1_i32_31 = arith.constant 1 : i32
    %107 = vector.broadcast %c1_i32_31 : i32 to vector<1x256xi32>
    %108 = arith.cmpi sge, %16, %107 : vector<1x256xi32>
    %cst_32 = arith.constant 0.000000e+00 : f32
    %109 = vector.shape_cast %108 : vector<1x256xi1> to vector<1x256xi1>
    %110 = vector.broadcast %109 : vector<1x256xi1> to vector<8x256xi1>
    %111 = vector.broadcast %cst_32 : f32 to vector<8x256xf32>
    %112 = arith.select %110, %106, %111 : vector<8x256xi1>, vector<8x256xf32>
    %113 = vector.extract_strided_slice %75 {offsets = [0, 33], sizes = [8, 256], strides = [1, 1]} : vector<8x290xf32> to vector<8x256xf32>
    %114 = vector.extract_strided_slice %75 {offsets = [0, 34], sizes = [8, 256], strides = [1, 1]} : vector<8x290xf32> to vector<8x256xf32>
    %c15_i32_33 = arith.constant 15 : i32
    %115 = vector.broadcast %c15_i32_33 : i32 to vector<1x256xi32>
    %116 = arith.cmpi slt, %16, %115 : vector<1x256xi32>
    %cst_34 = arith.constant 0.000000e+00 : f32
    %117 = vector.shape_cast %116 : vector<1x256xi1> to vector<1x256xi1>
    %118 = vector.broadcast %117 : vector<1x256xi1> to vector<8x256xi1>
    %119 = vector.broadcast %cst_34 : f32 to vector<8x256xf32>
    %120 = arith.select %118, %114, %119 : vector<8x256xi1>, vector<8x256xf32>
    %121 = tpu.concatenate %82, %83, %90, %97, %98, %105, %112, %113, %120 in 0 : vector<8x256xf32>, vector<8x256xf32>, vector<8x256xf32>, vector<8x256xf32>, vector<8x256xf32>, vector<8x256xf32>, vector<8x256xf32>, vector<8x256xf32>, vector<8x256xf32> -> vector<72x256xf32>
    %c0_35 = arith.constant 0 : index
    %c0_36 = arith.constant 0 : index
    %122 = vector.load %arg4[%c0_35, %c0_36] : memref<8x72xf32, #tpu.memory_space<vmem>>, vector<8x72xf32>
    %cst_37 = arith.constant dense<0.000000e+00> : vector<8x256xf32>
    %123 = tpu.matmul %122, %121, %cst_37 {dimension_numbers = #tpu.dot_dimension_numbers<[1], [0], [0], [1], [0, 0, 1, 1], [], []>} : vector<8x72xf32>, vector<72x256xf32>, vector<8x256xf32> -> vector<8x256xf32>
    %c0_38 = arith.constant 0 : index
    %c0_39 = arith.constant 0 : index
    %124 = vector.load %arg5[%c0_38, %c0_39] : memref<8x1xf32, #tpu.memory_space<vmem>>, vector<8x1xf32>
    %125 = vector.broadcast %124 : vector<8x1xf32> to vector<8x256xf32>
    %126 = arith.addf %123, %125 : vector<8x256xf32>
    %cst_40 = arith.constant 0.000000e+00 : f32
    %127 = vector.broadcast %cst_40 : f32 to vector<8x256xf32>
    %128 = arith.maximumf %126, %127 : vector<8x256xf32>
    %c0_41 = arith.constant 0 : index
    %c0_42 = arith.constant 0 : index
    %c0_43 = arith.constant 0 : index
    %129 = vector.load %arg6[%c0_41, %c0_42, %c0_43] : memref<1x8x256xf32, #tpu.memory_space<vmem>>, vector<1x8x256xf32>
    %130 = vector.shape_cast %129 : vector<1x8x256xf32> to vector<8x256xf32>
    %131 = vector.shape_cast %128 : vector<8x256xf32> to vector<1x8x256xf32>
    tpu.vector_store %arg6[%c0_41, %c0_42, %c0_43], %131 {strides = array<i32>} : memref<1x8x256xf32, #tpu.memory_space<vmem>>, vector<1x8x256xf32>,
    return
  }
  func.func @transform_0(%arg0: i32) -> (i32, i32, i32) {
    %c0_i32 = arith.constant 0 : i32
    %c0_i32_0 = arith.constant 0 : i32
    %c0_i32_1 = arith.constant 0 : i32
    return %arg0, %c0_i32, %c0_i32_0 : i32, i32, i32
  }
  func.func @transform_1(%arg0: i32) -> (i32, i32) {
    %c0_i32 = arith.constant 0 : i32
    %c0_i32_0 = arith.constant 0 : i32
    %c0_i32_1 = arith.constant 0 : i32
    return %c0_i32, %c0_i32_0 : i32, i32
  }
  func.func @transform_2(%arg0: i32) -> (i32, i32) {
    %c0_i32 = arith.constant 0 : i32
    %c0_i32_0 = arith.constant 0 : i32
    %c0_i32_1 = arith.constant 0 : i32
    return %c0_i32, %c0_i32_0 : i32, i32
  }
  func.func @transform_3(%arg0: i32) -> (i32, i32) {
    %c0_i32 = arith.constant 0 : i32
    %c0_i32_0 = arith.constant 0 : i32
    %c0_i32_1 = arith.constant 0 : i32
    return %c0_i32, %c0_i32_0 : i32, i32
  }
  func.func @transform_4(%arg0: i32) -> (i32, i32) {
    %c0_i32 = arith.constant 0 : i32
    %c0_i32_0 = arith.constant 0 : i32
    %c0_i32_1 = arith.constant 0 : i32
    return %c0_i32, %c0_i32_0 : i32, i32
  }
  func.func @transform_5(%arg0: i32) -> (i32, i32, i32) {
    %c0_i32 = arith.constant 0 : i32
    %c0_i32_0 = arith.constant 0 : i32
    %c0_i32_1 = arith.constant 0 : i32
    return %arg0, %c0_i32, %c0_i32_0 : i32, i32, i32
  }
}

</mosaic_0001>

<bundles_post_ra>
// kernel: _lambda_.1
= control target key start
LH: loop header
LB: loop body
LE: loop exit
PB: predicated region body
PF: predicated region fallthrough
CT: control target
= control target key end

     0   :  { %s945_s18 = smov 0   ;;  %s1160_s0 = inlined_call_operand.vmem [shape: f32[2,4,256], index: 0, kind: input, shape index: {}]   ;;  %s1161_s1 = inlined_call_operand.vmem [shape: f32[8,36], index: 1, kind: input, shape index: {}]   ;;  %s1162_s2 = inlined_call_operand.vmem [shape: f32[8,1], index: 2, kind: input, shape index: {}]   ;;  %s1163_s3 = inlined_call_operand.vmem [shape: f32[8,72], index: 3, kind: input, shape index: {}]   ;;  %s1164_s4 = inlined_call_operand.vmem [shape: f32[8,1], index: 4, kind: input, shape index: {}]   ;;  %s1165_s5 = inlined_call_operand.vmem [shape: f32[2,8,256], index: 5, kind: output, shape index: {}]  }
   0x1 LB: > { %s741_s19 = sadd.s32 4294967295, %s901_s18   ;;  %p745_p0 = scmp.ge.s32.totalorder %s901_s18, 1  ;;  %s901_s18 = sphi %s945_s18, %s15_s18  }
   0x2   : > { %p187_p1 = scmp.lt.s32.totalorder %s901_s18, 3 }
   0x4   : > { %p188_p2 = pnand %p745_p0, %p187_p1 }
   0x5   : > { %p215_p3 = scmp.lt.s32.totalorder (!%p188_p2), %s741_s19, 1  ;;  %s903_s24 = smov (!%p188_p2), 17   ;;  %vm259_vm0 = vcmask (!%p188_p2), 138240   ;;  %v911_v12 = vmov (!%p188_p2), 0.0   ;;  %v912_v13 = vmov (!%p188_p2), 0   ;;  %v405_v14 = vld [vmem:[%s1162_s2] sm:$0xff] (!%p188_p2)  ;;  %v225_v16 = vlaneseq (!%p188_p2) }
   0x6   : > { %191 = sbr.rel (%p188_p2) target bundleno = 987 (0x3db), region = 40  ;;  %s904_s25 = smov (!%p188_p2), 112   ;;  %485 = vmatprep.mubr.f32.mxu0 (!%p188_p2), %v911_v12  ;;  %857 = vset.pattern.permute.xlu1 (!%p188_p2), %v912_v13  ;;  %vm288_vm5 = vcmask (!%p188_p2), 1031168   ;;  %vm327_vm6 = vcmask (!%p188_p2), 785408   ;;  %vm301_vm7 = vcmask (!%p188_p2), 916480   ;;  %vm314_vm8 = vcmask (!%p188_p2), 900096  }
   0x7   : > { %s905_s26 = smov (!%p188_p2), 126   ;;  %s906_s27 = smov (!%p188_p2), 110   ;;  %675 = vmatprep.mubr.f32.mxu1 (!%p188_p2), %v911_v12  ;;  %893 = vset.pattern.permute.xlu0 (!%p188_p2), %v912_v13  ;;  %v226_v18 = vand.u32 (!%p188_p2), 127, %v225_v16  ;;  %vm373_vm9 = vcmask (!%p188_p2), 908288   ;;  %vm395_vm10 = vcmask (!%p188_p2), 1043456   ;;  %vm356_vm11 = vcmask (!%p188_p2), 1039360  }
   0x8   : > { %s907_s28 = smov (!%p188_p2), 127   ;;  %s908_s29 = smov (!%p188_p2), 96   ;;  %vm390_vm12 = vcmask (!%p188_p2), 777216   ;;  %vm340_vm13 = vcmask (!%p188_p2), 769024   ;;  %vm411_vm14 = vcmask (!%p188_p2), 293888   ;;  %vm914_vm15 = vmmov (!%p188_p2), 1  }
   0x9   : > { %s909_s30 = smov (!%p188_p2), 111   ;;  %s910_s6 = smov (!%p188_p2), 95   ;;  %v227_v20 = vadd.s32 (!%p188_p2), 128, %v226_v18  ;;  %v232_v22 = vand.u32 (!%p188_p2), 15, %v226_v18 }
   0xa   : > { %s913_s7 = smov (!%p188_p2), 94  }
   0xb   : > { %v239_v24 = vand.u32 (!%p188_p2), 15, %v227_v20  ;;  %vm998_vm1 = vcmp.ge.s32.totalorder (!%p188_p2), %v232_v22, 1  ;;  %vm1006_vm3 = vcmp.lt.s32.totalorder (!%p188_p2), %v232_v22, 15 }
   0xd   : > { %s1179_s19 = smov (!%p215_p3, %s741_s19), 1  ;;  %vm1002_vm2 = vcmp.ge.s32.totalorder %v239_v24, 1  ;;  %vm1010_vm4 = vcmp.lt.s32.totalorder %v239_v24, 15 }
   0xe   : > { %s768_s20 = sshll.u32 %s1179_s19, 3  ;;  %s769_s16 = sshll.u32 %s1179_s19, 4 }
   0xf   : > { %s219_s23 = scalar_lea.vmem %s1160_s0, %s768_s20  ;;  %s224_s21 = scalar_lea.vmem %s1165_s5, %s769_s16 }
  0x10   : > { %v252_v0 = vld [vmem:[%s219_s23] sm:$0xff] }
  0x11   : > { %255 = vrot.lane.b32.xlu0 %v252_v0, %s903_s24  ;;  %v254_v1 = vcombine.high %v252_v0, %v252_v0 }
  0x15   : > { %257 = vrot.lane.b32.xlu0 %v254_v1, %s903_s24 }
  0x83   : > { %v256_v2 = vpop.permute.xlu0 %255 }
  0x84   : > { %v962_v3 = vsel %vm259_vm0, 0.0, %v256_v2 }
  0x85   : > { %295 = vrot.lane.b32.xlu1 %v962_v3, %s904_s25  ;;  %v347_v8 = vrot.slane %v962_v3, 4  ;;  %v272_v34 = vsel %vm998_vm1, %v962_v3, 0.0 }
  0x87   : > { %v258_v4 = vpop.permute.xlu0 %257 }
  0x88   : > { %v967_v5 = vsel %vm259_vm0, %v256_v2, %v258_v4  ;;  %v265_v6 = vsel %vm259_vm0, %v258_v4, 0.0 }
  0x89   : > { %282 = vrot.lane.b32.xlu1 %v962_v3, %s905_s26  ;;  %v827_v7 = vpack.i.bf16 %v265_v6, %v967_v5  ;;  %v348_v9 = vrot.slane %v967_v5, 4  ;;  %v349_v10 = vrot.slane %v265_v6, 4  ;;  %v273_v37 = vsel %vm1002_vm2, %v967_v5, 0.0 }
  0x8b   : > { %828 = vrot.lane.b32.xlu0 %v827_v7, %s905_s26  ;;  %v847_v11 = vpack.i.bf16 %v349_v10, %v348_v9 }
  0x8d   : > { %308 = vrot.lane.b32.xlu1 %v962_v3, %s906_s27 }
  0x8f   : > { %350 = vrot.lane.b32.xlu0 %v347_v8, %s907_s28 }
  0x91   : > { %321 = vrot.lane.b32.xlu1 %v962_v3, %s908_s29 }
  0x93   : > { %838 = vrot.lane.b32.xlu0 %v827_v7, %s908_s29 }
  0x95   : > { %823 = vrot.lane.b32.xlu1 %v827_v7, %s904_s25 }
  0x97   : > { %843 = vrot.lane.b32.xlu0 %v827_v7, %s909_s30 }
  0x99   : > { %833 = vrot.lane.b32.xlu1 %v827_v7, %s906_s27 }
  0x9b   : > { %848 = vrot.lane.b32.xlu0 %v847_v11, %s907_s28 }
  0x9d   : > { %853 = vrot.lane.b32.xlu1 %v847_v11, %s910_s6 }
  0x9f   : > { %367 = vrot.lane.b32.xlu0 %v962_v3, %s909_s30 }
  0xa1   : > { %384 = vrot.lane.b32.xlu1 %v347_v8, %s910_s6 }
  0xa3   : > { %336 = vrot.lane.b32.xlu0 %v967_v5, %s913_s7 }
  0xa5   : > { %338 = vrot.lane.b32.xlu1 %v265_v6, %s913_s7 }
  0xa7   : > { %334 = vrot.lane.b32.xlu0 %v962_v3, %s913_s7 }
  0xa9   : > { %408 = vperm.xlu1 %857, %v405_v14  }
  0xf7   : > { %v296_v15 = vpop.permute.xlu1 %295 }
  0xfb   : > { %v283_v17 = vpop.permute.xlu1 %282 }
  0xfd   : > { %v829_v19 = vpop.permute.xlu0 %828 }
  0xfe   : > { %v831_v27 = vunpack.i.h.bf16 %v829_v19  ;;  %v830_v28 = vunpack.i.l.bf16 %v829_v19 }
  0xff   : > { %v309_v21 = vpop.permute.xlu1 %308 }
 0x100   : > { %v290_v40 = vsel %vm288_vm5, %v830_v28, %v831_v27  ;;  %v289_v44 = vsel %vm288_vm5, %v283_v17, %v830_v28 }
 0x101   : > { %v351_v23 = vpop.permute.xlu0 %350  ;;  %v294_v55 = vsel %vm1010_vm4, %v290_v40, 0.0  ;;  %v293_v56 = vsel %vm1006_vm3, %v289_v44, 0.0 }
 0x103   : > { %v322_v25 = vpop.permute.xlu1 %321 }
 0x105   : > { %v839_v29 = vpop.permute.xlu0 %838 }
 0x106   : > { %v840_v38 = vunpack.i.l.bf16 %v839_v29  ;;  %v841_v41 = vunpack.i.h.bf16 %v839_v29 }
 0x107   : > { %v824_v33 = vpop.permute.xlu1 %823 }
 0x108   : > { %v826_v35 = vunpack.i.h.bf16 %v824_v33  ;;  %v825_v36 = vunpack.i.l.bf16 %v824_v33  ;;  %v328_v53 = vsel %vm327_vm6, %v322_v25, %v840_v38  ;;  %v329_v62 = vsel %vm327_vm6, %v840_v38, %v841_v41 }
 0x109   : > { %v844_v39 = vpop.permute.xlu0 %843  ;;  %v333_v19 = vsel %vm1002_vm2, %v329_v62, 0.0 }
 0x10a   : > { %v302_v42 = vsel %vm301_vm7, %v296_v15, %v825_v36  ;;  %v303_v43 = vsel %vm301_vm7, %v825_v36, %v826_v35  ;;  %v846_v45 = vunpack.i.h.bf16 %v844_v39  ;;  %v845_v46 = vunpack.i.l.bf16 %v844_v39  ;;  %v404_v39 = vld [vmem:[%s1161_s1] sm:$0xff] }
 0x10b   : > { %v834_v47 = vpop.permute.xlu1 %833  ;;  %v307_v48 = vsel %vm1002_vm2, %v303_v43, 0.0  ;;  %v306_v49 = vsel %vm998_vm1, %v302_v42, 0.0 }
 0x10c   : > { %v836_v50 = vunpack.i.h.bf16 %v834_v47  ;;  %v835_v51 = vunpack.i.l.bf16 %v834_v47  ;;  %v364_v52 = vrot.slane %v307_v48, 4  ;;  %v363_v57 = vrot.slane %v306_v49, 4 }
 0x10d   : > { %v849_v54 = vpop.permute.xlu0 %848  ;;  %v375_v2 = vsel %vm373_vm9, %v845_v46, %v846_v45 }
 0x10e   : > { %v315_v58 = vsel %vm314_vm8, %v309_v21, %v835_v51  ;;  %v316_v59 = vsel %vm314_vm8, %v835_v51, %v836_v50  ;;  %v851_v60 = vunpack.i.h.bf16 %v849_v54  ;;  %v850_v61 = vunpack.i.l.bf16 %v849_v54 }
 0x10f   : > { %v319_v63 = vsel %vm1006_vm3, %v315_v58, 0.0  ;;  %v320_v0 = vsel %vm1010_vm4, %v316_v59, 0.0  ;;  %v854_v1 = vpop.permute.xlu1 %853  ;;  %v399_v6 = vsel %vm395_vm10, %v294_v55, %v364_v52  ;;  %v398_v11 = vsel %vm395_vm10, %v293_v56, %v363_v57 }
 0x110   : > { %v381_v3 = vrot.slane %v320_v0, 4  ;;  %v856_v4 = vunpack.i.h.bf16 %v854_v1  ;;  %v855_v5 = vunpack.i.l.bf16 %v854_v1  ;;  %v380_v7 = vrot.slane %v319_v63, 4 }
 0x111   : > { %v368_v8 = vpop.permute.xlu0 %367  ;;  %v358_v9 = vsel %vm356_vm11, %v850_v61, %v851_v60  ;;  %v357_v10 = vsel %vm356_vm11, %v351_v23, %v850_v61  ;;  %v332_v21 = vsel %vm998_vm1, %v328_v53, 0.0  ;;  %v601_v53 = vld [vmem:[%s1164_s4] sm:$0xff] }
 0x112   : > { %v374_v12 = vsel %vm373_vm9, %v368_v8, %v845_v46  ;;  %v397_v13 = vsel %vm395_vm10, %v273_v37, %v358_v9  ;;  %v396_v14 = vsel %vm395_vm10, %v272_v34, %v357_v10  ;;  %v392_v15 = vsel %vm390_vm12, %v855_v5, %v856_v4 }
 0x113   : > { %v385_v16 = vpop.permute.xlu1 %384  ;;  %v770_v17 = vpack.c.bf16 %v399_v6, %v397_v13  ;;  %v772_v18 = vpack.c.bf16 %v398_v11, %v396_v14  ;;  %v401_v20 = vsel %vm395_vm10, %v375_v2, %v381_v3  ;;  %v403_v23 = vsel %vm395_vm10, %v333_v19, %v392_v15 }
 0x114   : > { %v391_v22 = vsel %vm390_vm12, %v385_v16, %v855_v5  ;;  %v400_v24 = vsel %vm395_vm10, %v374_v12, %v380_v7  ;;  %v774_v28 = vpack.c.bf16 %v403_v23, %v401_v20 }
 0x115   : > { %v402_v25 = vsel %vm395_vm10, %v332_v21, %v391_v22  ;;  %771 = vmatprep.subr.bf16.mxu0 %v770_v17  ;;  %v337_v27 = vpop.permute.xlu0 %336 }
 0x116   : > { %773 = vmatpush1.bf16.msra.mxu0 %v772_v18  ;;  %v776_v29 = vpack.c.bf16 %v402_v25, %v400_v24 }
 0x117   : > { %775 = vmatprep.subr.bf16.mxu0 %v774_v28  ;;  %v339_v33 = vpop.permute.xlu1 %338 }
 0x118   : > { %v342_v34 = vsel %vm340_vm13, %v337_v27, %v339_v33 }
 0x119   : > { %v346_v35 = vsel %vm1010_vm4, %v342_v34, 0.0  ;;  %v335_v36 = vpop.permute.xlu0 %334 }
 0x11a   : > { %v341_v37 = vsel %vm340_vm13, %v335_v36, %v337_v27  ;;  %777 = vmatpush1.bf16.msra.mxu0 %v776_v29 }
 0x11b   : > { %v345_v38 = vsel %vm1006_vm3, %v341_v37, 0.0  ;;  %750 = vmatprep.subr.msk.mxu0 %vm395_vm10, %v346_v35 }
 0x11e   : > { %751 = vmatpush1.msk.msra.mxu0 %vm395_vm10, %v345_v38  ;;  %vm1106_vm10 = vmpackc.low %vm914_vm15, %vm998_vm1 }
 0x11f   : > { %752 = vmatmul.mubr.msk.f32.vlgmr.msra.gmra.mrb[0].mxu0 %vm411_vm14, %v404_v39 }
 0x128   : > { %v409_v40 = vpop.permute.xlu1 %408 }
 0x1f2   : > { %v487_v41 = vpop.f32.mrb[0].mxu0 }
 0x1f3   : > { %v488_v42 = vadd.f32 %v487_v41, %v409_v40  ;;  %v489_v43 = vpop.f32.mrb[1].mxu0 }
 0x1f4   : > { %v490_v44 = vadd.f32 %v489_v43, %v409_v40 }
 0x1f5   : > { %v492_v45 = vmax.f32 %v488_v42, 0.0 }
 0x1f6   : > { %v493_v46 = vmax.f32 %v490_v44, 0.0 }
 0x1f7   : > { %496 = vrot.lane.b32.xlu0 %v492_v45, %s903_s24 }
 0x1f8   : > { %498 = vrot.lane.b32.xlu1 %v493_v46, %s903_s24 }
 0x269   : > { %v497_v47 = vpop.permute.xlu0 %496 }
 0x26a   : > { %v504_v48 = vsel %vm259_vm0, 0.0, %v497_v47  ;;  %v499_v49 = vpop.permute.xlu1 %498 }
 0x26b   : > { %510 = vrot.lane.b32.xlu0 %v504_v48, %s905_s26  ;;  %570 = vrot.lane.b32.xlu1 %v504_v48, %s907_s28  ;;  %v500_v50 = vsel %vm259_vm0, %v497_v47, %v499_v49  ;;  %v505_v51 = vsel %vm259_vm0, %v499_v49, 0.0  ;;  %vm1098_vm0 = vmpackc.low %vm914_vm15, %vm1002_vm2  ;;  %v600_v49 = vld [vmem:[%s1163_s3] sm:$0xff] }
 0x26c   : > { %v868_v52 = vpack.i.bf16 %v505_v51, %v500_v50 }
 0x26f   : > { %534 = vrot.lane.b32.xlu0 %v504_v48, %s906_s27  ;;  %522 = vrot.lane.b32.xlu1 %v504_v48, %s904_s25 }
 0x273   : > { %546 = vrot.lane.b32.xlu0 %v504_v48, %s908_s29  ;;  %580 = vrot.lane.b32.xlu1 %v504_v48, %s909_s30 }
 0x277   : > { %869 = vrot.lane.b32.xlu1 %v868_v52, %s904_s25  ;;  %859 = vrot.lane.b32.xlu0 %v868_v52, %s907_s28 }
 0x27b   : > { %879 = vrot.lane.b32.xlu1 %v868_v52, %s909_s30  ;;  %864 = vrot.lane.b32.xlu0 %v868_v52, %s905_s26 }
 0x27f   : > { %889 = vrot.lane.b32.xlu1 %v868_v52, %s910_s6  ;;  %874 = vrot.lane.b32.xlu0 %v868_v52, %s906_s27 }
 0x283   : > { %590 = vrot.lane.b32.xlu1 %v504_v48, %s910_s6  ;;  %884 = vrot.lane.b32.xlu0 %v868_v52, %s908_s29 }
 0x287   : > { %562 = vrot.lane.b32.xlu1 %v505_v51, %s913_s7  ;;  %560 = vrot.lane.b32.xlu0 %v500_v50, %s913_s7 }
 0x28b   : > { %604 = vperm.xlu1 %857, %v601_v53   ;;  %558 = vrot.lane.b32.xlu0 %v504_v48, %s913_s7 }
 0x2dd   : > { %v511_v54 = vpop.permute.xlu0 %510  ;;  %v571_v55 = vpop.permute.xlu1 %570 }
 0x2e1   : > { %v535_v56 = vpop.permute.xlu0 %534  ;;  %v523_v57 = vpop.permute.xlu1 %522 }
 0x2e5   : > { %v547_v58 = vpop.permute.xlu0 %546  ;;  %v581_v59 = vpop.permute.xlu1 %580 }
 0x2e9   : > { %v870_v60 = vpop.permute.xlu1 %869  ;;  %v860_v61 = vpop.permute.xlu0 %859 }
 0x2ea   : > { %v862_v62 = vunpack.i.h.bf16 %v860_v61  ;;  %v861_v63 = vunpack.i.l.bf16 %v860_v61  ;;  %v872_v0 = vunpack.i.h.bf16 %v870_v60  ;;  %v871_v1 = vunpack.i.l.bf16 %v870_v60 }
 0x2ec   : > { %v577_v2 = vsel %vm356_vm11, %v861_v63, %v862_v62  ;;  %v576_v4 = vsel %vm356_vm11, %v571_v55, %v861_v63  ;;  %v528_v14 = vsel %vm301_vm7, %v523_v57, %v871_v1  ;;  %v529_v15 = vsel %vm301_vm7, %v871_v1, %v872_v0  ;;  %vm785_vm11 = vmpackc.low %vm1002_vm2, %vm1010_vm4 }
 0x2ed   : > { %v880_v5 = vpop.permute.xlu1 %879  ;;  %v865_v6 = vpop.permute.xlu0 %864  ;;  %v778_v7 = vpack.c.bf16 %v577_v2, %v500_v50  ;;  %v781_v8 = vpack.c.bf16 %v576_v4, %v504_v48  ;;  %vm788_vm7 = vmpackc.low %vm998_vm1, %vm1006_vm3 }
 0x2ee   : > { %v867_v10 = vunpack.i.h.bf16 %v865_v6  ;;  %v866_v11 = vunpack.i.l.bf16 %v865_v6  ;;  %v882_v12 = vunpack.i.h.bf16 %v880_v5  ;;  %v881_v13 = vunpack.i.l.bf16 %v880_v5  ;;  %vm791_vm2 = vmpackc.low %vm1010_vm4, %vm914_vm15 }
 0x2ef   : > { %780 = vmatprep.subr.msk.bf16.mxu1 %vm1098_vm0, %v778_v7  ;;  %vm794_vm1 = vmpackc.low %vm1006_vm3, %vm914_vm15 }
 0x2f0   : > { %v516_v16 = vsel %vm288_vm5, %v511_v54, %v866_v11  ;;  %v517_v17 = vsel %vm288_vm5, %v866_v11, %v867_v10  ;;  %783 = vmatpush1.bf16.msk.msra.mxu1 %vm1106_vm10, %v781_v8  ;;  %v586_v24 = vsel %vm373_vm9, %v581_v59, %v881_v13  ;;  %v587_v25 = vsel %vm373_vm9, %v881_v13, %v882_v12 }
 0x2f1   : > { %v784_v18 = vpack.c.bf16 %v529_v15, %v517_v17  ;;  %v787_v19 = vpack.c.bf16 %v528_v14, %v516_v16  ;;  %v890_v20 = vpop.permute.xlu1 %889  ;;  %v875_v21 = vpop.permute.xlu0 %874  ;;  %vm607_vm5 = vcmask 588800  }
 0x2f2   : > { %v877_v22 = vunpack.i.h.bf16 %v875_v21  ;;  %v876_v23 = vunpack.i.l.bf16 %v875_v21  ;;  %v892_v27 = vunpack.i.h.bf16 %v890_v20  ;;  %v891_v28 = vunpack.i.l.bf16 %v890_v20 }
 0x2f3   : > { %786 = vmatprep.subr.msk.bf16.mxu1 %vm785_vm11, %v784_v18 }
 0x2f4   : > { %v540_v30 = vsel %vm314_vm8, %v535_v56, %v876_v23  ;;  %v541_v29 = vsel %vm314_vm8, %v876_v23, %v877_v22  ;;  %789 = vmatpush1.bf16.msk.msra.mxu1 %vm788_vm7, %v787_v19  ;;  %v597_v38 = vsel %vm390_vm12, %v891_v28, %v892_v27 }
 0x2f5   : > { %v790_v26 = vpack.c.bf16 %v541_v29, %v587_v25  ;;  %v793_v33 = vpack.c.bf16 %v540_v30, %v586_v24  ;;  %v591_v34 = vpop.permute.xlu1 %590  ;;  %v885_v35 = vpop.permute.xlu0 %884 }
 0x2f6   : > { %v887_v36 = vunpack.i.h.bf16 %v885_v35  ;;  %v886_v37 = vunpack.i.l.bf16 %v885_v35  ;;  %v596_v39 = vsel %vm390_vm12, %v591_v34, %v891_v28 }
 0x2f7   : > { %792 = vmatprep.subr.msk.bf16.mxu1 %vm791_vm2, %v790_v26 }
 0x2f8   : > { %v552_v40 = vsel %vm327_vm6, %v547_v58, %v886_v37  ;;  %v553_v41 = vsel %vm327_vm6, %v886_v37, %v887_v36  ;;  %795 = vmatpush1.bf16.msk.msra.mxu1 %vm794_vm1, %v793_v33 }
 0x2f9   : > { %v796_v42 = vpack.c.bf16 %v597_v38, %v553_v41  ;;  %v799_v43 = vpack.c.bf16 %v596_v39, %v552_v40  ;;  %v563_v44 = vpop.permute.xlu1 %562  ;;  %v561_v45 = vpop.permute.xlu0 %560 }
 0x2fa   : > { %v565_v46 = vsel %vm340_vm13, %v561_v45, %v563_v44 }
 0x2fb   : > { %798 = vmatprep.subr.msk.bf16.mxu1 %vm1098_vm0, %v796_v42 }
 0x2fc   : > { %801 = vmatpush1.bf16.msk.msra.mxu1 %vm1106_vm10, %v799_v43 }
 0x2fd   : > { %v559_v47 = vpop.permute.xlu0 %558  ;;  %763 = vmatprep.subr.msk.mxu1 %vm1010_vm4, %v565_v46 }
 0x2fe   : > { %v564_v48 = vsel %vm340_vm13, %v559_v47, %v561_v45 }
 0x300   : > { %764 = vmatpush1.msk.msra.mxu1 %vm1006_vm3, %v564_v48 }
 0x301   : > { %765 = vmatmul.mubr.msk.f32.vlgmr.msra.gmra.mrb[0].mxu1 %vm607_vm5, %v600_v49 }
 0x30a   : > { %v605_v50 = vpop.permute.xlu1 %604 }
 0x3d4   : > { %v677_v51 = vpop.f32.mrb[0].mxu1 }
 0x3d5   : > { %v678_v52 = vadd.f32 %v677_v51, %v605_v50  ;;  %v679_v53 = vpop.f32.mrb[1].mxu1 }
 0x3d6   : > { %v680_v32 = vadd.f32 %v679_v53, %v605_v50 }
 0x3d7   : > { %v682_v54 = vmax.f32 %v678_v52, 0.0 }
 0x3d8   : > { %v683_v55 = vmax.f32 %v680_v32, 0.0 }
 0x3d9   : > { %684 = vst [vmem:[%s224_s21] sm:$0xff] %v682_v54 }
 0x3da   : > { %685 = vst [vmem:[%s224_s21 + $0x8] sm:$0xff] %v683_v55 }
 0x3db PF: > { %s15_s18 = sadd.s32 1, %s901_s18  }
 0x3dc   : > { %p12_p4 = scmp.ge.s32.totalorder %s15_s18, 4  }
 0x3de   :  { %14 = sbr.rel (!%p12_p4) target bundleno = 1 (0x1), region = 70 }

</bundles_post_ra>
